<compile_context>
chip_gen: v7x
topology: tpu7x:2x2x1
jax: 0.10.0
libtpu: 0.0.40
codegen_flags: <defaults>
</compile_context>

<pallas_src>
import math

import jax
import jax.numpy as jnp
from jax.experimental import pallas as pl

# ---- model hyper-params (small, consistent with the module's __init__) ----
D_MODEL = 32
N_HEADS = 4
HEAD_DIM = D_MODEL // N_HEADS
SEQ = 8
BATCH = 2
LN_EPS = 1e-5

_SQRT_HALF = 1.0 / math.sqrt(2.0)
_NEG_BIG = -1e30


def _layer_norm(x, gamma, beta):
    mu = jnp.mean(x, axis=-1, keepdims=True)
    var = jnp.mean(jnp.square(x - mu), axis=-1, keepdims=True)
    return (x - mu) * jax.lax.rsqrt(var + LN_EPS) * gamma + beta


def _gelu_exact(x):  # PyTorch nn.GELU() default (erf form)
    return 0.5 * x * (1.0 + jax.lax.erf(x * _SQRT_HALF))


def decoder_block_kernel(x_ref, w_ref, w2t_ref, vec_ref, aux_ref, o_ref):
    """Refs:
      x_ref:   (N=S*B, D) activations, rows seq-major / batch-minor.
      w_ref:   (D, 384)  = [Wqkv_ext^T (128 lanes) | W1^T (128) | Wout^T (32) | pad].
      w2t_ref: (4D, D)   = W2^T (FFN-down in natural layout).
      vec_ref: (8, 128)  = LN params + biases (row 4 = qkv bias; lanes 96:128 = 1.0 -> ones block).
      aux_ref: (NH*N, 128) = [block-diag 0/1 mask (64,64) | additive same-batch mask (16,64)].
    """
    N, D = x_ref.shape                       # 16, 32
    NH = N_HEADS

    x = x_ref[...]
    w = w_ref[...]
    w2t = w2t_ref[...]
    vec = vec_ref[...]
    aux = aux_ref[...]

    # ---- packed parameter / constant views (static slices of loaded values) ----
    ln1_g = vec[0:1, 0:D]
    ln1_b = vec[1:2, 0:D]
    ln2_g = vec[2:3, 0:D]
    ln2_b = vec[3:4, 0:D]
    b_qkv = vec[4:5, :]                       # (1,128); lanes 96:128 = 1.0 (ones block)
    b_out = vec[5:6, 0:D]
    b_ff1 = vec[6:7, 0:4 * D]
    b_ff2 = vec[7:8, 0:D]

    w_qkv = w[:, 0:128]                       # (D,128) = [Wq^T*scale | Wk^T | Wv^T | 0]
    w_ff1 = w[:, 128:256]                     # (D,4D)  = W1^T
    w_out = w[:, 256:256 + D]                 # (D,D)   = Wout^T

    bd_mask = aux[:, 0:2 * D]                 # (NH*N, 2D) 0/1 block-diagonal mask
    attn_add = aux[0:N, 2 * D:2 * D + NH * N]  # (N, NH*N) additive same-batch mask (0 / -1e30)

    # ---- LayerNorm1 + fused QKV(+ones) projection  (MXU push 1) ----
    xn = _layer_norm(x, ln1_g, ln1_b)
    qkv = jnp.dot(xn, w_qkv, preferred_element_type=jnp.float32) + b_qkv   # (N, 128)
    q = qkv[:, 0:D]                            # already scaled by 1/sqrt(HEAD_DIM)
    k = qkv[:, D:2 * D]
    vx = qkv[:, 2 * D:4 * D]                   # (N, 2D) = [V | ones]

    # ---- attention: all heads in one lane-packed pass ----
    # Block-diagonal K (NH*N, D): head h lives in rows h*N:(h+1)*N, lanes h*HD:(h+1)*HD.
    k_bd = jnp.concatenate([k] * NH, axis=0) * bd_mask[:, 0:D]
    # Scores (MXU push 2): s[r, h*N + c] = q_h[r] . k_h[c]  (scale pre-folded), plus batch mask.
    s = jax.lax.dot_general(q, k_bd, (((1,), (1,)), ((), ())),
                            preferred_element_type=jnp.float32) + attn_add  # (N, NH*N)
    s = s - jnp.max(s, axis=-1, keepdims=True)   # global row max: exact softmax shift, no overflow
    p = jnp.exp(s)                               # masked entries underflow to exactly 0

    # Block-diagonal [V | 1] (NH*N, 2D).  One matmul (MXU push 3) yields the unnormalized context
    # in lanes 0:D and the per-head softmax denominators, already broadcast over each head's
    # HEAD_DIM lanes, in lanes D:2D.
    cv_bd = jnp.concatenate([vx] * NH, axis=0) * bd_mask
    cd = jnp.dot(p, cv_bd, preferred_element_type=jnp.float32)              # (N, 2D)
    ctx = cd[:, 0:D] * pl.reciprocal(cd[:, D:2 * D], approx=True)           # normalized context

    # Single out-projection (MXU push 4) + residual (heads never lane-concatenated explicitly).
    x1 = x + jnp.dot(ctx, w_out, preferred_element_type=jnp.float32) + b_out

    # ---- LayerNorm2 + FFN (MXU pushes 5, 6); dropout = identity at eval ----
    x2n = _layer_norm(x1, ln2_g, ln2_b)
    h1 = jnp.dot(x2n, w_ff1, preferred_element_type=jnp.float32) + b_ff1    # (N, 4D)
    g = _gelu_exact(h1)
    y = jnp.dot(g, w2t, preferred_element_type=jnp.float32) + b_ff2         # (N, D)
    o_ref[...] = x1 + y


def pack_params(params):
    """One-time packing of the 12 PyTorch-layout tensors (+ constant masks) into 4 aligned slabs."""
    (ln1_g, ln1_b, w_in, b_in, w_out, b_out,
     ln2_g, ln2_b, w1, b1, w2, b2) = params
    D, HD, NH, N = D_MODEL, HEAD_DIM, N_HEADS, SEQ * BATCH
    scale = 1.0 / math.sqrt(HD)

    # fold the softmax 1/sqrt(head_dim) scale into the Q projection (free at pack time)
    w_in = w_in.at[0:D, :].multiply(scale)
    b_in = b_in.at[0:D].multiply(scale)

    w_slab = jnp.zeros((D, 384), jnp.float32)
    w_slab = w_slab.at[:, 0:3 * D].set(w_in.T)          # [Wq^T*s | Wk^T | Wv^T]; lanes 96:128 = 0
    w_slab = w_slab.at[:, 128:128 + 4 * D].set(w1.T)    # W1^T
    w_slab = w_slab.at[:, 256:256 + D].set(w_out.T)     # Wout^T (lanes 288:384 = pad)

    w2t = jnp.asarray(w2.T, jnp.float32)                # (4D, D) = W2^T, natural contraction layout

    vec = jnp.zeros((8, 128), jnp.float32)
    vec = vec.at[0, 0:D].set(ln1_g)
    vec = vec.at[1, 0:D].set(ln1_b)
    vec = vec.at[2, 0:D].set(ln2_g)
    vec = vec.at[3, 0:D].set(ln2_b)
    vec = vec.at[4, 0:3 * D].set(b_in)
    vec = vec.at[4, 3 * D:4 * D].set(1.0)               # ones block -> fused softmax denominators
    vec = vec.at[5, 0:D].set(b_out)
    vec = vec.at[6, 0:4 * D].set(b1)
    vec = vec.at[7, 0:D].set(b2)

    # precomputed constant masks (kernel does no iota / mod / compare / select)
    i = jnp.arange(NH * N)[:, None]
    j = jnp.arange(2 * D)[None, :]
    bd_mask = ((i // N) == ((j % D) // HD)).astype(jnp.float32)             # (NH*N, 2D)
    r = jnp.arange(N)[:, None]
    c = jnp.arange(NH * N)[None, :] % N
    attn_add = jnp.where((r % BATCH) == (c % BATCH), 0.0, _NEG_BIG).astype(jnp.float32)  # (N,NH*N)

    aux = jnp.zeros((NH * N, 128), jnp.float32)
    aux = aux.at[:, 0:2 * D].set(bd_mask)
    aux = aux.at[0:N, 2 * D:2 * D + NH * N].set(attn_add)
    return w_slab, w2t, vec, aux


@jax.jit
def decoder_block(x_sbd, w_slab, w2t, vec_slab, aux_slab):
    """x_sbd: (seq, batch, d_model) float32 — same layout as the PyTorch module."""
    S, B, D = x_sbd.shape
    x2d = x_sbd.reshape(S * B, D)    # contiguous reshape; rows stay seq-major / batch-minor
    out2d = pl.pallas_call(
        decoder_block_kernel,
        out_shape=jax.ShapeDtypeStruct((S * B, D), x_sbd.dtype),
        # gridless: one invocation, all operands resident in VMEM (~100 KiB total)
    )(x2d, w_slab, w2t, vec_slab, aux_slab)
    return out2d.reshape(S, B, D)


# ---- pure-JAX reference (mirrors the PyTorch forward in eval mode) ----
def decoder_block_ref(x_sbd, params):
    (ln1_g, ln1_b, w_in, b_in, w_out, b_out,
     ln2_g, ln2_b, w1, b1, w2, b2) = params
    S, B, D = x_sbd.shape
    H, hd = N_HEADS, HEAD_DIM

    def ln(t, g, bta):
        mu = t.mean(-1, keepdims=True)
        var = jnp.square(t - mu).mean(-1, keepdims=True)
        return (t - mu) / jnp.sqrt(var + LN_EPS) * g + bta

    xn = ln(x_sbd, ln1_g, ln1_b)
    qkv = xn @ w_in.T + b_in
    q, k, v = jnp.split(qkv, 3, axis=-1)

    def split_heads(t):
        return t.reshape(S, B, H, hd).transpose(1, 2, 0, 3)  # (B, H, S, hd)

    qh, kh, vh = split_heads(q), split_heads(k), split_heads(v)
    s = jnp.einsum("bhsd,bhtd->bhst", qh, kh) / math.sqrt(hd)
    p = jax.nn.softmax(s, axis=-1)
    ctx = jnp.einsum("bhst,bhtd->bhsd", p, vh).transpose(2, 0, 1, 3).reshape(S, B, D)
    attn = ctx @ w_out.T + b_out
    x1 = x_sbd + attn
    h1 = ln(x1, ln2_g, ln2_b) @ w1.T + b1
    y = jax.nn.gelu(h1, approximate=False) @ w2.T + b2
    return x1 + y


def _init_params(key):
    D = D_MODEL
    ks = jax.random.split(key, 9)
    s = 0.05
    return (
        jnp.ones((D,), jnp.float32), jnp.zeros((D,), jnp.float32),          # layer_norm1
        s * jax.random.normal(ks[0], (3 * D, D), jnp.float32),              # in_proj_weight
        s * jax.random.normal(ks[1], (3 * D,), jnp.float32),                # in_proj_bias
        s * jax.random.normal(ks[2], (D, D), jnp.float32),                  # out_proj.weight
        s * jax.random.normal(ks[3], (D,), jnp.float32),                    # out_proj.bias
        jnp.ones((D,), jnp.float32), jnp.zeros((D,), jnp.float32),          # layer_norm2
        s * jax.random.normal(ks[4], (4 * D, D), jnp.float32),              # ffn W1
        s * jax.random.normal(ks[5], (4 * D,), jnp.float32),                # ffn b1
        s * jax.random.normal(ks[6], (D, 4 * D), jnp.float32),              # ffn W2
        s * jax.random.normal(ks[7], (D,), jnp.float32),                    # ffn b2
    )


if __name__ == "__main__":
    key = jax.random.PRNGKey(0)
    kx, kp = jax.random.split(key)
    x = jax.random.normal(kx, (SEQ, BATCH, D_MODEL), jnp.float32)
    params = _init_params(kp)

    slabs = pack_params(params)      # hoisted out of the forward call (done once)

    out = jax.block_until_ready(decoder_block(x, *slabs))
    ref = decoder_block_ref(x, params)

    assert out.shape == (SEQ, BATCH, D_MODEL)
    max_err = float(jnp.max(jnp.abs(out - ref)))
    assert jnp.allclose(out, ref, atol=5e-3, rtol=5e-3), f"max abs err {max_err}"
    print("KERNEL_OK")
</pallas_src>

<mosaic_0001>
module attributes {stable_mosaic.version = 11 : i64} {
  func.func @decoder_block_kernel(%arg0: memref<16x32xf32, #tpu.memory_space<vmem>>, %arg1: memref<32x384xf32, #tpu.memory_space<vmem>>, %arg2: memref<128x32xf32, #tpu.memory_space<vmem>>, %arg3: memref<8x128xf32, #tpu.memory_space<vmem>>, %arg4: memref<64x128xf32, #tpu.memory_space<vmem>>, %arg5: memref<16x32xf32, #tpu.memory_space<vmem>>) attributes {dimension_semantics = [], scalar_prefetch = 0 : i64, scratch_operands = 0 : i64, tpu.core_type = #tpu.core_type<tc>} {
    %c0 = arith.constant 0 : index
    %c0_0 = arith.constant 0 : index
    %0 = vector.load %arg0[%c0, %c0_0] : memref<16x32xf32, #tpu.memory_space<vmem>>, vector<16x32xf32>
    %c0_1 = arith.constant 0 : index
    %c0_2 = arith.constant 0 : index
    %1 = vector.load %arg1[%c0_1, %c0_2] : memref<32x384xf32, #tpu.memory_space<vmem>>, vector<32x384xf32>
    %c0_3 = arith.constant 0 : index
    %c0_4 = arith.constant 0 : index
    %2 = vector.load %arg2[%c0_3, %c0_4] : memref<128x32xf32, #tpu.memory_space<vmem>>, vector<128x32xf32>
    %c0_5 = arith.constant 0 : index
    %c0_6 = arith.constant 0 : index
    %3 = vector.load %arg3[%c0_5, %c0_6] : memref<8x128xf32, #tpu.memory_space<vmem>>, vector<8x128xf32>
    %c0_7 = arith.constant 0 : index
    %c0_8 = arith.constant 0 : index
    %4 = vector.load %arg4[%c0_7, %c0_8] : memref<64x128xf32, #tpu.memory_space<vmem>>, vector<64x128xf32>
    %5 = vector.extract_strided_slice %3 {offsets = [0, 0], sizes = [1, 32], strides = [1, 1]} : vector<8x128xf32> to vector<1x32xf32>
    %6 = vector.extract_strided_slice %3 {offsets = [1, 0], sizes = [1, 32], strides = [1, 1]} : vector<8x128xf32> to vector<1x32xf32>
    %7 = vector.extract_strided_slice %3 {offsets = [2, 0], sizes = [1, 32], strides = [1, 1]} : vector<8x128xf32> to vector<1x32xf32>
    %8 = vector.extract_strided_slice %3 {offsets = [3, 0], sizes = [1, 32], strides = [1, 1]} : vector<8x128xf32> to vector<1x32xf32>
    %9 = vector.extract_strided_slice %3 {offsets = [4, 0], sizes = [1, 128], strides = [1, 1]} : vector<8x128xf32> to vector<1x128xf32>
    %10 = vector.extract_strided_slice %3 {offsets = [5, 0], sizes = [1, 32], strides = [1, 1]} : vector<8x128xf32> to vector<1x32xf32>
    %11 = vector.extract_strided_slice %3 {offsets = [6, 0], sizes = [1, 128], strides = [1, 1]} : vector<8x128xf32> to vector<1x128xf32>
    %12 = vector.extract_strided_slice %3 {offsets = [7, 0], sizes = [1, 32], strides = [1, 1]} : vector<8x128xf32> to vector<1x32xf32>
    %13 = vector.extract_strided_slice %1 {offsets = [0, 0], sizes = [32, 128], strides = [1, 1]} : vector<32x384xf32> to vector<32x128xf32>
    %14 = vector.extract_strided_slice %1 {offsets = [0, 128], sizes = [32, 128], strides = [1, 1]} : vector<32x384xf32> to vector<32x128xf32>
    %15 = vector.extract_strided_slice %1 {offsets = [0, 256], sizes = [32, 32], strides = [1, 1]} : vector<32x384xf32> to vector<32x32xf32>
    %16 = vector.extract_strided_slice %4 {offsets = [0, 0], sizes = [64, 64], strides = [1, 1]} : vector<64x128xf32> to vector<64x64xf32>
    %17 = vector.extract_strided_slice %4 {offsets = [0, 64], sizes = [16, 64], strides = [1, 1]} : vector<64x128xf32> to vector<16x64xf32>
    %cst = arith.constant dense<0.000000e+00> : vector<16xf32>
    %18 = vector.multi_reduction <add>, %0, %cst [1] : vector<16x32xf32> to vector<16xf32>
    %19 = vector.shape_cast %18 : vector<16xf32> to vector<16x1xf32>
    %cst_9 = arith.constant 3.200000e+01 : f32
    %20 = vector.broadcast %cst_9 : f32 to vector<16x1xf32>
    %21 = arith.divf %19, %20 : vector<16x1xf32>
    %22 = vector.broadcast %21 : vector<16x1xf32> to vector<16x32xf32>
    %23 = arith.subf %0, %22 : vector<16x32xf32>
    %24 = arith.mulf %23, %23 : vector<16x32xf32>
    %cst_10 = arith.constant dense<0.000000e+00> : vector<16xf32>
    %25 = vector.multi_reduction <add>, %24, %cst_10 [1] : vector<16x32xf32> to vector<16xf32>
    %26 = vector.shape_cast %25 : vector<16xf32> to vector<16x1xf32>
    %cst_11 = arith.constant 3.200000e+01 : f32
    %27 = vector.broadcast %cst_11 : f32 to vector<16x1xf32>
    %28 = arith.divf %26, %27 : vector<16x1xf32>
    %29 = vector.broadcast %21 : vector<16x1xf32> to vector<16x32xf32>
    %30 = arith.subf %0, %29 : vector<16x32xf32>
    %cst_12 = arith.constant 9.99999974E-6 : f32
    %31 = vector.broadcast %cst_12 : f32 to vector<16x1xf32>
    %32 = arith.addf %28, %31 : vector<16x1xf32>
    %33 = math.rsqrt %32 : vector<16x1xf32>
    %34 = vector.broadcast %33 : vector<16x1xf32> to vector<16x32xf32>
    %35 = arith.mulf %30, %34 : vector<16x32xf32>
    %36 = vector.broadcast %5 : vector<1x32xf32> to vector<16x32xf32>
    %37 = arith.mulf %35, %36 : vector<16x32xf32>
    %38 = vector.broadcast %6 : vector<1x32xf32> to vector<16x32xf32>
    %39 = arith.addf %37, %38 : vector<16x32xf32>
    %cst_13 = arith.constant dense<0.000000e+00> : vector<16x128xf32>
    %40 = tpu.matmul %39, %13, %cst_13 {dimension_numbers = #tpu.dot_dimension_numbers<[1], [0], [0], [1], [0, 0, 1, 1], [], []>} : vector<16x32xf32>, vector<32x128xf32>, vector<16x128xf32> -> vector<16x128xf32>
    %41 = vector.broadcast %9 : vector<1x128xf32> to vector<16x128xf32>
    %42 = arith.addf %40, %41 : vector<16x128xf32>
    %43 = vector.extract_strided_slice %42 {offsets = [0, 0], sizes = [16, 32], strides = [1, 1]} : vector<16x128xf32> to vector<16x32xf32>
    %44 = vector.extract_strided_slice %42 {offsets = [0, 32], sizes = [16, 32], strides = [1, 1]} : vector<16x128xf32> to vector<16x32xf32>
    %45 = vector.extract_strided_slice %42 {offsets = [0, 64], sizes = [16, 64], strides = [1, 1]} : vector<16x128xf32> to vector<16x64xf32>
    %46 = tpu.concatenate %44, %44, %44, %44 in 0 : vector<16x32xf32>, vector<16x32xf32>, vector<16x32xf32>, vector<16x32xf32> -> vector<64x32xf32>
    %47 = vector.extract_strided_slice %16 {offsets = [0, 0], sizes = [64, 32], strides = [1, 1]} : vector<64x64xf32> to vector<64x32xf32>
    %48 = arith.mulf %46, %47 : vector<64x32xf32>
    %cst_14 = arith.constant dense<0.000000e+00> : vector<16x64xf32>
    %49 = tpu.matmul %43, %48, %cst_14 {dimension_numbers = #tpu.dot_dimension_numbers<[1], [1], [0], [0], [0, 0, 1, 0], [], []>} : vector<16x32xf32>, vector<64x32xf32>, vector<16x64xf32> -> vector<16x64xf32>
    %50 = arith.addf %49, %17 : vector<16x64xf32>
    %cst_15 = arith.constant dense<0xFF800000> : vector<16xf32>
    %51 = vector.multi_reduction <maximumf>, %50, %cst_15 [1] : vector<16x64xf32> to vector<16xf32>
    %52 = vector.shape_cast %51 : vector<16xf32> to vector<16x1xf32>
    %53 = vector.broadcast %52 : vector<16x1xf32> to vector<16x64xf32>
    %54 = arith.subf %50, %53 : vector<16x64xf32>
    %55 = math.exp %54 : vector<16x64xf32>
    %56 = tpu.concatenate %45, %45, %45, %45 in 0 : vector<16x64xf32>, vector<16x64xf32>, vector<16x64xf32>, vector<16x64xf32> -> vector<64x64xf32>
    %57 = arith.mulf %56, %16 : vector<64x64xf32>
    %cst_16 = arith.constant dense<0.000000e+00> : vector<16x64xf32>
    %58 = tpu.matmul %55, %57, %cst_16 {dimension_numbers = #tpu.dot_dimension_numbers<[1], [0], [0], [1], [0, 0, 1, 1], [], []>} : vector<16x64xf32>, vector<64x64xf32>, vector<16x64xf32> -> vector<16x64xf32>
    %59 = vector.extract_strided_slice %58 {offsets = [0, 0], sizes = [16, 32], strides = [1, 1]} : vector<16x64xf32> to vector<16x32xf32>
    %60 = vector.extract_strided_slice %58 {offsets = [0, 32], sizes = [16, 32], strides = [1, 1]} : vector<16x64xf32> to vector<16x32xf32>
    %61 = tpu.reciprocal %60 {approx = true} : vector<16x32xf32> -> vector<16x32xf32>
    %62 = arith.mulf %59, %61 : vector<16x32xf32>
    %cst_17 = arith.constant dense<0.000000e+00> : vector<16x32xf32>
    %63 = tpu.matmul %62, %15, %cst_17 {dimension_numbers = #tpu.dot_dimension_numbers<[1], [0], [0], [1], [0, 0, 1, 1], [], []>} : vector<16x32xf32>, vector<32x32xf32>, vector<16x32xf32> -> vector<16x32xf32>
    %64 = arith.addf %0, %63 : vector<16x32xf32>
    %65 = vector.broadcast %10 : vector<1x32xf32> to vector<16x32xf32>
    %66 = arith.addf %64, %65 : vector<16x32xf32>
    %cst_18 = arith.constant dense<0.000000e+00> : vector<16xf32>
    %67 = vector.multi_reduction <add>, %66, %cst_18 [1] : vector<16x32xf32> to vector<16xf32>
    %68 = vector.shape_cast %67 : vector<16xf32> to vector<16x1xf32>
    %cst_19 = arith.constant 3.200000e+01 : f32
    %69 = vector.broadcast %cst_19 : f32 to vector<16x1xf32>
    %70 = arith.divf %68, %69 : vector<16x1xf32>
    %71 = vector.broadcast %70 : vector<16x1xf32> to vector<16x32xf32>
    %72 = arith.subf %66, %71 : vector<16x32xf32>
    %73 = arith.mulf %72, %72 : vector<16x32xf32>
    %cst_20 = arith.constant dense<0.000000e+00> : vector<16xf32>
    %74 = vector.multi_reduction <add>, %73, %cst_20 [1] : vector<16x32xf32> to vector<16xf32>
    %75 = vector.shape_cast %74 : vector<16xf32> to vector<16x1xf32>
    %cst_21 = arith.constant 3.200000e+01 : f32
    %76 = vector.broadcast %cst_21 : f32 to vector<16x1xf32>
    %77 = arith.divf %75, %76 : vector<16x1xf32>
    %78 = vector.broadcast %70 : vector<16x1xf32> to vector<16x32xf32>
    %79 = arith.subf %66, %78 : vector<16x32xf32>
    %cst_22 = arith.constant 9.99999974E-6 : f32
    %80 = vector.broadcast %cst_22 : f32 to vector<16x1xf32>
    %81 = arith.addf %77, %80 : vector<16x1xf32>
    %82 = math.rsqrt %81 : vector<16x1xf32>
    %83 = vector.broadcast %82 : vector<16x1xf32> to vector<16x32xf32>
    %84 = arith.mulf %79, %83 : vector<16x32xf32>
    %85 = vector.broadcast %7 : vector<1x32xf32> to vector<16x32xf32>
    %86 = arith.mulf %84, %85 : vector<16x32xf32>
    %87 = vector.broadcast %8 : vector<1x32xf32> to vector<16x32xf32>
    %88 = arith.addf %86, %87 : vector<16x32xf32>
    %cst_23 = arith.constant dense<0.000000e+00> : vector<16x128xf32>
    %89 = tpu.matmul %88, %14, %cst_23 {dimension_numbers = #tpu.dot_dimension_numbers<[1], [0], [0], [1], [0, 0, 1, 1], [], []>} : vector<16x32xf32>, vector<32x128xf32>, vector<16x128xf32> -> vector<16x128xf32>
    %90 = vector.broadcast %11 : vector<1x128xf32> to vector<16x128xf32>
    %91 = arith.addf %89, %90 : vector<16x128xf32>
    %cst_24 = arith.constant 5.000000e-01 : f32
    %92 = vector.broadcast %cst_24 : f32 to vector<16x128xf32>
    %93 = arith.mulf %92, %91 : vector<16x128xf32>
    %cst_25 = arith.constant 0.707106769 : f32
    %94 = vector.broadcast %cst_25 : f32 to vector<16x128xf32>
    %95 = arith.mulf %91, %94 : vector<16x128xf32>
    %96 = math.erf %95 : vector<16x128xf32>
    %cst_26 = arith.constant 1.000000e+00 : f32
    %97 = vector.broadcast %cst_26 : f32 to vector<16x128xf32>
    %98 = arith.addf %97, %96 : vector<16x128xf32>
    %99 = arith.mulf %93, %98 : vector<16x128xf32>
    %cst_27 = arith.constant dense<0.000000e+00> : vector<16x32xf32>
    %100 = tpu.matmul %99, %2, %cst_27 {dimension_numbers = #tpu.dot_dimension_numbers<[1], [0], [0], [1], [0, 0, 1, 1], [], []>} : vector<16x128xf32>, vector<128x32xf32>, vector<16x32xf32> -> vector<16x32xf32>
    %101 = vector.broadcast %12 : vector<1x32xf32> to vector<16x32xf32>
    %102 = arith.addf %100, %101 : vector<16x32xf32>
    %103 = arith.addf %66, %102 : vector<16x32xf32>
    %c0_28 = arith.constant 0 : index
    %c0_29 = arith.constant 0 : index
    %104 = vector.load %arg5[%c0_28, %c0_29] : memref<16x32xf32, #tpu.memory_space<vmem>>, vector<16x32xf32>
    tpu.vector_store %arg5[%c0_28, %c0_29], %103 {strides = array<i32>} : memref<16x32xf32, #tpu.memory_space<vmem>>, vector<16x32xf32>,
    return
  }
}

</mosaic_0001>

<bundles_post_ra>
// kernel: decoder_block.1
= control target key start
LH: loop header
LB: loop body
LE: loop exit
PB: predicated region body
PF: predicated region fallthrough
CT: control target
= control target key end

     0   :  { %10 = vsyncpa [#allocation3], 0  ;;  %s1577_s0 = inlined_call_operand.hbm [shape: f32[16,32], index: 0, kind: input, shape index: {}]   ;;  %s1578_s1 = inlined_call_operand.vmem [shape: f32[32,384], index: 1, kind: input, shape index: {}]   ;;  %s1579_s2 = inlined_call_operand.vmem [shape: f32[128,32], index: 2, kind: input, shape index: {}]   ;;  %s1580_s3 = inlined_call_operand.vmem [shape: f32[8,128], index: 3, kind: input, shape index: {}]   ;;  %s1581_s4 = inlined_call_operand.vmem [shape: f32[64,128], index: 4, kind: input, shape index: {}]   ;;  %s1582_s5 = inlined_call_operand.hbm [shape: f32[16,32], index: 5, kind: output, shape index: {}]  }
   0x1   :  { %11 = vsyncpa [#allocation4], 0  ;;  %s1243_s18 = smov [#allocation2]   ;;  %s1195_s22 = scalar_lea.hbm %s1577_s0, 256 }
   0x2   :  { %s17_s19 = sshll.u32 %s1243_s18, 4  ;;  %p1196_p0 = scmp.ne.s32.totalorder %s1577_s0, %s1195_s22  ;;  %s18_s19 = int_to_ptr.vmem [resolvable:$true] %s17_s19 }
   0x3   :  { %p1199_p1 = scmp.lt.u32.totalorder %s1195_s22, %s1577_s0 }
   0x5   :  { %p1201_p2 = pnand %p1199_p1, %p1196_p0 }
   0x7   :  { %1204 = shalt.err (!%p1201_p2)
}
   0x8   :  { %s1205_s27 = scalar_lea.vmem %s18_s19, 256  ;;  %p1210_p4 = scmp.lt.s32.totalorder %s18_s19, %s18_s19 }
   0x9   :  { %p1206_p3 = scmp.ne.s32.totalorder %s18_s19, %s1205_s27  ;;  %p1211_p5 = scmp.lt.s32.totalorder %s1205_s27, %s1205_s27 }
   0xb   :  { %p1212_p6 = por %p1211_p5, %p1210_p4 }
   0xd   :  { %p1213_p7 = pnand %p1212_p6, %p1206_p3 }
   0xf   :  { %1216 = shalt.err (!%p1213_p7)
}
  0x10   :  { %s1244_s28 = smov 128   ;;  %s1245_s29 = smov 8  }
  0x11   :  { %23 = dma.hbm_to_vmem [thread:$0]  %s1577_s0, 256, %s18_s19, [#allocation3], %s1244_s28, %s1244_s28, %s1245_s29  }
  0x12   :  { %1239 = dma.done.wait [#allocation3], 256  }
  0x13   :  { %1240 = vsyncadd [#allocation3], 4294967040  ;;  %vm74_vm0 = vcmask 261120   ;;  %v1295_v0 = vld [vmem:[#allocation2] sm:$0xff]  ;;  %v1297_v1 = vld [vmem:[#allocation2 + $0x8] sm:$0xff]  ;;  %s1246_s16 = smov 32   ;;  %v102_v30 = vlaneseq }
  0x14   :  { %v75_v2 = vsel %vm74_vm0, %v1295_v0, 0.0  ;;  %v78_v3 = vsel %vm74_vm0, %v1297_v1, 0.0  ;;  %v37_v14 = vld [vmem:[%s1578_s1] sm:$0xff]  ;;  %v40_v15 = vld [vmem:[%s1578_s1 + $0x18] sm:$0xff]  ;;  %v43_v16 = vld [vmem:[%s1578_s1 + $0x30] sm:$0xff]  ;;  %vm366_vm2 = vcmask 523264  }
  0x15   :  { %76 = vadd.xlane.f32.xlu0 %v75_v2  ;;  %v1032_v17 = vpack.c.bf16 %v40_v15, %v37_v14  ;;  %v46_v18 = vld [vmem:[%s1578_s1 + $0x48] sm:$0xff]  ;;  %v1328_v21 = vld [vmem:[%s1581_s4] sm:$0xff]  ;;  %v1333_v22 = vld [vmem:[%s1581_s4 + $0x10] sm:$0xff]  ;;  %v1367_v34 = vshrl.u32 %v102_v30, 7 }
  0x16   :  { %v1036_v19 = vpack.c.bf16 %v46_v18, %v43_v16  ;;  %v1322_v20 = vld [vmem:[%s1581_s4 + $0x8] sm:$0xff]  ;;  %v1339_v23 = vld [vmem:[%s1581_s4 + $0x20] sm:$0xff]  ;;  %v1345_v24 = vld [vmem:[%s1581_s4 + $0x18] sm:$0xff] }
  0x17   :  { %1033 = vmatprep.subr.bf16.mxu0 %v1032_v17  ;;  %v1351_v25 = vld [vmem:[%s1581_s4 + $0x30] sm:$0xff]  ;;  %v1357_v26 = vld [vmem:[%s1581_s4 + $0x28] sm:$0xff]  ;;  %v1364_v27 = vld [vmem:[%s1581_s4 + $0x38] sm:$0xff]  ;;  %v104_v36 = vsub.s32 0, %v1367_v34  ;;  %v110_v38 = vsub.s32 1, %v1367_v34  ;;  %v116_v53 = vsub.s32 4, %v1367_v34 }
  0x18   :  { %1035 = vmatpush3.bf16.msra.mxu0 %v1032_v17  ;;  %v1373_v37 = vld [vmem:[%s1580_s3] sm:$0xff]  ;;  %s1247_s3 = smov 96   ;;  %s1248_s4 = smov 64   ;;  %vm1418_vm1 = vmpackc.low %vm74_vm0, %vm74_vm0 }
  0x19   :  { %79 = vadd.xlane.f32.xlu0 %v78_v3  ;;  %1037 = vmatprep.subr.bf16.mxu0 %v1036_v19  ;;  %v105_v39 = vrot.slane %v1373_v37, %v104_v36  ;;  %v111_v42 = vrot.slane %v1373_v37, %v110_v38  ;;  %v117_v56 = vrot.slane %v1373_v37, %v116_v53 }
  0x1c   :  { %1039 = vmatpush3.bf16.msra.mxu0 %v1036_v19 }
  0x2f   :  { %207 = vrot.lane.b32.xlu0 %v1328_v21, %s1246_s16 }
  0x33   :  { %215 = vrot.lane.b32.xlu0 %v1339_v23, %s1246_s16 }
  0x37   :  { %219 = vrot.lane.b32.xlu0 %v1351_v25, %s1246_s16 }
  0xa2   :  { %v77_v4 = vpop.xlane.xlu0 %76 }
  0xa3   :  { %v82_v5 = vmul.f32 0.03125, %v77_v4 }
  0xa5   :  { %v84_v6 = vsub.f32 %v1295_v0, %v82_v5 }
  0xa6   :  { %v80_v7 = vpop.xlane.xlu0 %79 }
  0xa7   :  { %v83_v8 = vmul.f32 0.03125, %v80_v7  ;;  %v86_v9 = vmul.f32 %v84_v6, %v84_v6 }
  0xa9   :  { %v85_v10 = vsub.f32 %v1297_v1, %v83_v8  ;;  %v88_v11 = vsel %vm74_vm0, %v86_v9, 0.0 }
  0xaa   :  { %89 = vadd.xlane.f32.xlu1 %v88_v11  ;;  %v208_v52 = vpop.permute.xlu0 %207 }
  0xab   :  { %v87_v12 = vmul.f32 %v85_v10, %v85_v10 }
  0xad   :  { %v91_v13 = vsel %vm74_vm0, %v87_v12, 0.0 }
  0xae   :  { %92 = vadd.xlane.f32.xlu1 %v91_v13  ;;  %v216_v55 = vpop.permute.xlu0 %215 }
  0xb2   :  { %v220_v62 = vpop.permute.xlu0 %219 }
  0xbf   :  { %209 = vrot.lane.b32.xlu1 %v1322_v20, %s1246_s16 }
  0xc3   :  { %211 = vrot.lane.b32.xlu1 %v1333_v22, %s1246_s16 }
  0xc7   :  { %213 = vrot.lane.b32.xlu1 %v1345_v24, %s1246_s16 }
  0xcb   :  { %217 = vrot.lane.b32.xlu1 %v1357_v26, %s1246_s16 }
  0xcf   :  { %221 = vrot.lane.b32.xlu1 %v1364_v27, %s1246_s16 }
 0x137   :  { %v90_v28 = vpop.xlane.xlu1 %89 }
 0x138   :  { %v94_v29 = vmul.f32 0.03125, %v90_v28 }
 0x13a   :  { %v96_v31 = vadd.f32 1e-05, %v94_v29 }
 0x13b   :  { %v93_v32 = vpop.xlane.xlu1 %92 }
 0x13c   :  { %1175 = vrsqrt.f32 %v96_v31  ;;  %v95_v33 = vmul.f32 0.03125, %v93_v32 }
 0x13e   :  { %v97_v35 = vadd.f32 1e-05, %v95_v33 }
 0x13f   :  { %v210_v49 = vpop.permute.xlu1 %209 }
 0x140   :  { %1177 = vrsqrt.f32 %v97_v35 }
 0x143   :  { %v212_v50 = vpop.permute.xlu1 %211 }
 0x146   :  { %v1176_v40 = vpop.eup %1175 }
 0x147   :  { %v100_v41 = vmul.f32 %v1176_v40, %v84_v6  ;;  %v214_v51 = vpop.permute.xlu1 %213 }
 0x149   :  { %v106_v43 = vmul.f32 %v105_v39, %v100_v41 }
 0x14a   :  { %v1178_v44 = vpop.eup %1177 }
 0x14b   :  { %v101_v45 = vmul.f32 %v1178_v44, %v85_v10  ;;  %v112_v46 = vadd.f32 %v111_v42, %v106_v43  ;;  %v218_v54 = vpop.permute.xlu1 %217 }
 0x14d   :  { %v107_v47 = vmul.f32 %v105_v39, %v101_v45  ;;  %934 = vmatprep.mubr.msk.f32.mxu0 %vm74_vm0, %v112_v46 }
 0x14f   :  { %v113_v48 = vadd.f32 %v111_v42, %v107_v47  ;;  %v222_v61 = vpop.permute.xlu1 %221 }
 0x151   :  { %935 = vmatmul.mubr.msk.f32.vlgmr.msra.gmra.mrb[0].mxu0 %vm74_vm0, %v113_v48 }
 0x224   :  { %v936_v57 = vpop.f32.mrb[0].mxu0 }
 0x225   :  { %v1382_v58 = vadd.f32 %v936_v57, %v117_v56  ;;  %v190_v59 = vpop.f32.mrb[1].mxu0 }
 0x226   :  { %v1384_v60 = vadd.f32 %v190_v59, %v117_v56 }
 0x227   :  { %v234_v63 = vmul.f32 %v214_v51, %v1382_v58  ;;  %v232_v2 = vmul.f32 %v210_v49, %v1382_v58  ;;  %v238_v5 = vmul.f32 %v222_v61, %v1382_v58  ;;  %v236_v6 = vmul.f32 %v218_v54, %v1382_v58 }
 0x228   :  { %953 = vmatprep.mubr.msk.f32.mxu1 %vm74_vm0, %v1384_v60  ;;  %v233_v3 = vmul.f32 %v212_v50, %v1384_v60  ;;  %v231_v4 = vmul.f32 %v208_v52, %v1384_v60  ;;  %v237_v7 = vmul.f32 %v220_v62, %v1384_v60  ;;  %v235_v10 = vmul.f32 %v216_v55, %v1384_v60 }
 0x22a   :  { %v1140_v8 = vpack.i.bf16 %v234_v63, %v233_v3  ;;  %v1135_v9 = vpack.i.bf16 %v232_v2, %v231_v4  ;;  %v1150_v11 = vpack.i.bf16 %v238_v5, %v237_v7  ;;  %v1145_v12 = vpack.i.bf16 %v236_v6, %v235_v10 }
 0x22c   :  { %1141 = vrot.lane.b32.xlu1 %v1140_v8, %s1247_s3  ;;  %1136 = vrot.lane.b32.xlu0 %v1135_v9, %s1247_s3 }
 0x230   :  { %1146 = vrot.lane.b32.xlu0 %v1145_v12, %s1247_s3  ;;  %1151 = vrot.lane.b32.xlu1 %v1150_v11, %s1247_s3 }
 0x234   :  { %263 = vrot.lane.b32.xlu0 %v1328_v21, %s1248_s4  ;;  %265 = vrot.lane.b32.xlu1 %v1322_v20, %s1248_s4 }
 0x238   :  { %379 = vrot.lane.b32.xlu0 %v1333_v22, %s1248_s4  ;;  %381 = vrot.lane.b32.xlu1 %v1345_v24, %s1248_s4 }
 0x23c   :  { %383 = vrot.lane.b32.xlu0 %v1339_v23, %s1248_s4  ;;  %385 = vrot.lane.b32.xlu1 %v1357_v26, %s1248_s4 }
 0x240   :  { %387 = vrot.lane.b32.xlu0 %v1351_v25, %s1248_s4  ;;  %389 = vrot.lane.b32.xlu1 %v1364_v27, %s1248_s4 }
 0x29e   :  { %v1142_v13 = vpop.permute.xlu1 %1141  ;;  %v1137_v14 = vpop.permute.xlu0 %1136 }
 0x29f   :  { %v1144_v15 = vunpack.i.h.bf16 %v1142_v13  ;;  %v1143_v16 = vunpack.i.l.bf16 %v1142_v13  ;;  %v1139_v17 = vunpack.i.h.bf16 %v1137_v14  ;;  %v1138_v18 = vunpack.i.l.bf16 %v1137_v14 }
 0x2a1   :  { %v1040_v20 = vpack.c.bf16 %v1139_v17, %v1138_v18  ;;  %v1046_v23 = vpack.c.bf16 %v1144_v15, %v1143_v16 }
 0x2a2   :  { %v1152_v21 = vpop.permute.xlu1 %1151  ;;  %v1147_v22 = vpop.permute.xlu0 %1146 }
 0x2a3   :  { %1042 = vmatprep.subr.msk.bf16.mxu1 %vm1418_vm1, %v1040_v20  ;;  %v1149_v26 = vunpack.i.h.bf16 %v1147_v22  ;;  %v1148_v27 = vunpack.i.l.bf16 %v1147_v22  ;;  %v1154_v41 = vunpack.i.h.bf16 %v1152_v21  ;;  %v1153_v42 = vunpack.i.l.bf16 %v1152_v21  ;;  %v42_v21 = vld [vmem:[%s1578_s1 + $0x28] sm:$0xff] }
 0x2a4   :  { %1045 = vmatpush3.bf16.xpose.msk.msra.mxu1 %vm1418_vm1, %v1040_v20  ;;  %v39_v20 = vld [vmem:[%s1578_s1 + $0x10] sm:$0xff] }
 0x2a5   :  { %1048 = vmatprep.subr.msk.bf16.mxu1 %vm1418_vm1, %v1046_v23  ;;  %v1052_v33 = vpack.c.bf16 %v1149_v26, %v1148_v27  ;;  %v1058_v46 = vpack.c.bf16 %v1154_v41, %v1153_v42  ;;  %v1080_v22 = vpack.c.bf16 %v42_v21, %v39_v20 }
 0x2a6   :  { %v266_v24 = vpop.permute.xlu1 %265  ;;  %v264_v25 = vpop.permute.xlu0 %263 }
 0x2a7   :  { %v398_v28 = vmul.f32 %v266_v24, %v1382_v58  ;;  %v397_v29 = vmul.f32 %v264_v25, %v1384_v60 }
 0x2a9   :  { %v1155_v30 = vpack.i.bf16 %v398_v28, %v397_v29 }
 0x2aa   :  { %v382_v31 = vpop.permute.xlu1 %381  ;;  %v380_v32 = vpop.permute.xlu0 %379 }
 0x2ab   :  { %v400_v35 = vmul.f32 %v382_v31, %v1382_v58  ;;  %v399_v36 = vmul.f32 %v380_v32, %v1384_v60  ;;  %1156 = vrot.lane.b32.xlu0 %v1155_v30, %s1248_s4 }
 0x2ac   :  { %1051 = vmatpush3.bf16.xpose.msk.msra.mxu1 %vm1418_vm1, %v1046_v23  ;;  %v45_v23 = vld [vmem:[%s1578_s1 + $0x40] sm:$0xff] }
 0x2ad   :  { %v1160_v38 = vpack.i.bf16 %v400_v35, %v399_v36  ;;  %1054 = vmatprep.subr.msk.bf16.mxu1 %vm1418_vm1, %v1052_v33  ;;  %v615_v35 = vsub.s32 5, %v1367_v34 }
 0x2ae   :  { %v386_v39 = vpop.permute.xlu1 %385  ;;  %v384_v40 = vpop.permute.xlu0 %383 }
 0x2af   :  { %v402_v43 = vmul.f32 %v386_v39, %v1382_v58  ;;  %v401_v44 = vmul.f32 %v384_v40, %v1384_v60  ;;  %1161 = vrot.lane.b32.xlu1 %v1160_v38, %s1248_s4  ;;  %v616_v36 = vrot.slane %v1373_v37, %v615_v35  ;;  %v61_v35 = vld [vmem:[%s1579_s2 + $0x60] sm:$0xff] }
 0x2b1   :  { %v1165_v45 = vpack.i.bf16 %v402_v43, %v401_v44 }
 0x2b2   :  { %v388_v47 = vpop.permute.xlu0 %387  ;;  %v390_v48 = vpop.permute.xlu1 %389 }
 0x2b3   :  { %v404_v3 = vmul.f32 %v390_v48, %v1382_v58  ;;  %v403_v4 = vmul.f32 %v388_v47, %v1384_v60 }
 0x2b4   :  { %1057 = vmatpush3.bf16.xpose.msk.msra.mxu1 %vm1418_vm1, %v1052_v33 }
 0x2b5   :  { %1060 = vmatprep.subr.msk.bf16.mxu1 %vm1418_vm1, %v1058_v46  ;;  %v1170_v5 = vpack.i.bf16 %v404_v3, %v403_v4  ;;  %v52_v4 = vld [vmem:[%s1579_s2 + $0x18] sm:$0xff] }
 0x2bc   :  { %1063 = vmatpush3.bf16.xpose.msk.msra.mxu1 %vm1418_vm1, %v1058_v46 }
 0x2c3   :  { %954 = vmatmul.mubr.msk.f32.vlgmr.msra.gmra.mrb[0].mxu1 %vm74_vm0, %v1382_v58 }
 0x31d   :  { %v1157_v49 = vpop.permute.xlu0 %1156 }
 0x31e   :  { %v1159_v50 = vunpack.i.h.bf16 %v1157_v49  ;;  %v1158_v51 = vunpack.i.l.bf16 %v1157_v49 }
 0x320   :  { %v1064_v52 = vpack.c.bf16 %v1159_v50, %v1158_v51 }
 0x321   :  { %v1162_v53 = vpop.permute.xlu1 %1161 }
 0x322   :  { %v1164_v54 = vunpack.i.h.bf16 %v1162_v53  ;;  %v1163_v55 = vunpack.i.l.bf16 %v1162_v53  ;;  %1065 = vmatprep.subr.bf16.mxu0 %v1064_v52 }
 0x323   :  { %1067 = vmatpush3.bf16.msra.mxu0 %v1064_v52 }
 0x324   :  { %v1068_v56 = vpack.c.bf16 %v1164_v54, %v1163_v55  ;;  %v38_v54 = vld [vmem:[%s1578_s1 + $0x8] sm:$0xff]  ;;  %v41_v55 = vld [vmem:[%s1578_s1 + $0x20] sm:$0xff] }
 0x326   :  { %1069 = vmatprep.subr.bf16.mxu0 %v1068_v56 }
 0x327   :  { %1071 = vmatpush3.bf16.msra.mxu0 %v1068_v56  ;;  %v1088_v56 = vpack.c.bf16 %v41_v55, %v38_v54 }
 0x396   :  { %v955_v57 = vpop.f32.mrb[0].mxu1 }
 0x397   :  { %v363_v59 = vadd.f32 %v955_v57, %v266_v24  ;;  %v357_v61 = vpop.f32.mrb[1].mxu1  ;;  %v48_v24 = vld [vmem:[%s1578_s1 + $0x58] sm:$0xff] }
 0x398   :  { %v358_v62 = vadd.f32 %v357_v61, %v264_v25  ;;  %v1084_v25 = vpack.c.bf16 %v48_v24, %v45_v23  ;;  %v44_v57 = vld [vmem:[%s1578_s1 + $0x38] sm:$0xff] }
 0x399   :  { %v370_v63 = vsel %vm366_vm2, %v363_v59, -inf }
 0x39a   :  { %371 = vmax.xlane.f32.xlu1 %v370_v63  ;;  %v367_v2 = vsel %vm366_vm2, %v358_v62, -inf  ;;  %v50_v63 = vld [vmem:[%s1579_s2 + $0x8] sm:$0xff] }
 0x39b   :  { %368 = vmax.xlane.f32.xlu0 %v367_v2  ;;  %v51_v2 = vld [vmem:[%s1579_s2 + $0x10] sm:$0xff] }
 0x3ab   :  { %1171 = vrot.lane.b32.xlu1 %v1170_v5, %s1248_s4  ;;  %v1100_v5 = vpack.c.bf16 %v52_v4, %v51_v2 }
 0x3b1   :  { %1166 = vrot.lane.b32.xlu0 %v1165_v45, %s1248_s4 }
 0x427   :  { %v372_v6 = vpop.xlane.xlu1 %371 }
 0x428   :  { %v374_v7 = vsub.f32 %v363_v59, %v372_v6  ;;  %v369_v8 = vpop.xlane.xlu0 %368  ;;  %v47_v59 = vld [vmem:[%s1578_s1 + $0x50] sm:$0xff]  ;;  %v53_v6 = vld [vmem:[%s1579_s2 + $0x20] sm:$0xff] }
 0x429   :  { %v373_v9 = vsub.f32 %v358_v62, %v369_v8  ;;  %v1092_v61 = vpack.c.bf16 %v47_v59, %v44_v57  ;;  %v49_v62 = vld [vmem:[%s1579_s2] sm:$0xff]  ;;  %v754_v59 = vsub.s32 7, %v1367_v34 }
 0x42a   :  { %v377_v10 = vmul.f32 1.442695, %v374_v7  ;;  %v1096_v3 = vpack.c.bf16 %v50_v63, %v49_v62  ;;  %v54_v7 = vld [vmem:[%s1579_s2 + $0x28] sm:$0xff] }
 0x42b   :  { %v375_v11 = vmul.f32 1.442695, %v373_v9  ;;  %v1172_v12 = vpop.permute.xlu1 %1171  ;;  %v1104_v8 = vpack.c.bf16 %v54_v7, %v53_v6 }
 0x42c   :  { %v1174_v13 = vunpack.i.h.bf16 %v1172_v12  ;;  %v1167_v14 = vpop.permute.xlu0 %1166  ;;  %v1173_v15 = vunpack.i.l.bf16 %v1172_v12  ;;  %1097 = vmatprep.subr.bf16.mxu1 %v1096_v3 }
 0x42d   :  { %1179 = vpow2.f32 %v375_v11  ;;  %v1169_v16 = vunpack.i.h.bf16 %v1167_v14  ;;  %v1168_v58 = vunpack.i.l.bf16 %v1167_v14  ;;  %1099 = vmatpush3.bf16.msra.mxu1 %v1096_v3 }
 0x42e   :  { %1181 = vpow2.f32 %v377_v10  ;;  %v1076_v17 = vpack.c.bf16 %v1174_v13, %v1173_v15  ;;  %1101 = vmatprep.subr.bf16.mxu1 %v1100_v5  ;;  %v647_v15 = vsub.s32 2, %v1367_v34 }
 0x42f   :  { %v1072_v60 = vpack.c.bf16 %v1169_v16, %v1168_v58  ;;  %v653_v16 = vsub.s32 3, %v1367_v34 }
 0x430   :  { %v648_v58 = vrot.slane %v1373_v37, %v647_v15 }
 0x431   :  { %1073 = vmatprep.subr.bf16.mxu0 %v1072_v60  ;;  %1103 = vmatpush3.bf16.msra.mxu1 %v1100_v5 }
 0x432   :  { %1075 = vmatpush3.bf16.msra.mxu0 %v1072_v60  ;;  %1105 = vmatprep.subr.bf16.mxu1 %v1104_v8 }
 0x433   :  { %1077 = vmatprep.subr.bf16.mxu0 %v1076_v17 }
 0x435   :  { %1107 = vmatpush3.bf16.msra.mxu1 %v1104_v8 }
 0x436   :  { %1079 = vmatpush3.bf16.msra.mxu0 %v1076_v17 }
 0x437   :  { %v1180_v18 = vpop.eup %1179  ;;  %1081 = vmatprep.subr.bf16.mxu0 %v1080_v22 }
 0x438   :  { %v1182_v19 = vpop.eup %1181  ;;  %972 = vmatprep.mubr.msk.f32.mxu0 %vm366_vm2, %v1180_v18  ;;  %v654_v18 = vrot.slane %v1373_v37, %v653_v16 }
 0x439   :  { %973 = vmatmul.mubr.msk.f32.vlgmr.msra.gmra.mrb[2].mxu0 %vm366_vm2, %v1182_v19 }
 0x43a   :  { %1083 = vmatpush3.bf16.msra.mxu0 %v1080_v22 }
 0x43b   :  { %1085 = vmatprep.subr.bf16.mxu0 %v1084_v25 }
 0x43e   :  { %1087 = vmatpush3.bf16.msra.mxu0 %v1084_v25  ;;  %v55_v25 = vld [vmem:[%s1579_s2 + $0x30] sm:$0xff] }
 0x43f   :  { %1089 = vmatprep.subr.bf16.mxu0 %v1088_v56 }
 0x50c   :  { %v974_v26 = vpop.f32.mrb[2].mxu0 }
 0x50d   :  { %1183 = vrcp.f32 %v974_v26  ;;  %v509_v27 = vpop.f32.mrb[3].mxu0 }
 0x50e   :  { %1185 = vrcp.f32 %v509_v27 }
 0x517   :  { %v1184_v28 = vpop.eup %1183 }
 0x518   :  { %v1186_v29 = vpop.eup %1185  ;;  %524 = vrot.lane.b32.xlu1 %v1184_v28, %s1247_s3  ;;  %v57_v28 = vld [vmem:[%s1579_s2 + $0x40] sm:$0xff] }
 0x519   :  { %522 = vrot.lane.b32.xlu0 %v1186_v29, %s1247_s3  ;;  %v58_v29 = vld [vmem:[%s1579_s2 + $0x48] sm:$0xff] }
 0x58a   :  { %v525_v30 = vpop.permute.xlu1 %524 }
 0x58b   :  { %v523_v31 = vpop.permute.xlu0 %522  ;;  %v529_v33 = vmul.f32 %v974_v26, %v525_v30  ;;  %v56_v26 = vld [vmem:[%s1579_s2 + $0x38] sm:$0xff]  ;;  %v1112_v30 = vpack.c.bf16 %v58_v29, %v57_v28 }
 0x58c   :  { %v528_v32 = vmul.f32 %v523_v31, %v509_v27  ;;  %v1108_v27 = vpack.c.bf16 %v56_v26, %v55_v25  ;;  %v59_v31 = vld [vmem:[%s1579_s2 + $0x50] sm:$0xff] }
 0x58e   :  { %983 = vmatprep.mubr.msk.f32.mxu0 %vm74_vm0, %v528_v32  ;;  %1109 = vmatprep.subr.bf16.mxu1 %v1108_v27  ;;  %v60_v32 = vld [vmem:[%s1579_s2 + $0x58] sm:$0xff] }
 0x58f   :  { %984 = vmatmul.mubr.msk.f32.vlgmr.msra.gmra.mrb[4].mxu0 %vm74_vm0, %v529_v33  ;;  %1111 = vmatpush3.bf16.msra.mxu1 %v1108_v27  ;;  %v1116_v33 = vpack.c.bf16 %v60_v32, %v59_v31 }
 0x590   :  { %1091 = vmatpush3.bf16.msra.mxu0 %v1088_v56  ;;  %1113 = vmatprep.subr.bf16.mxu1 %v1112_v30 }
 0x591   :  { %1093 = vmatprep.subr.bf16.mxu0 %v1092_v61 }
 0x593   :  { %1115 = vmatpush3.bf16.msra.mxu1 %v1112_v30 }
 0x594   :  { %1095 = vmatpush3.bf16.msra.mxu0 %v1092_v61  ;;  %1117 = vmatprep.subr.bf16.mxu1 %v1116_v33  ;;  %v755_v61 = vrot.slane %v1373_v37, %v754_v59 }
 0x597   :  { %1119 = vmatpush3.bf16.msra.mxu1 %v1116_v33 }
 0x662   :  { %v985_v38 = vpop.f32.mrb[4].mxu0 }
 0x663   :  { %v612_v39 = vadd.f32 %v985_v38, %v1297_v1  ;;  %v602_v40 = vpop.f32.mrb[5].mxu0 }
 0x664   :  { %v611_v41 = vadd.f32 %v602_v40, %v1295_v0  ;;  %v64_v40 = vld [vmem:[%s1579_s2 + $0x78] sm:$0xff] }
 0x665   :  { %v1476_v42 = vadd.f32 %v616_v36, %v612_v39  ;;  %v63_v39 = vld [vmem:[%s1579_s2 + $0x70] sm:$0xff] }
 0x666   :  { %v1478_v43 = vadd.f32 %v616_v36, %v611_v41  ;;  %v62_v36 = vld [vmem:[%s1579_s2 + $0x68] sm:$0xff]  ;;  %v1124_v41 = vpack.c.bf16 %v64_v40, %v63_v39  ;;  %s1249_s2 = smov [#allocation5]  }
 0x667   :  { %v622_v44 = vsel %vm74_vm0, %v1476_v42, 0.0  ;;  %v1120_v38 = vpack.c.bf16 %v62_v36, %v61_v35  ;;  %s840_s0 = sshll.u32 %s1249_s2, 4  ;;  %s841_s0 = int_to_ptr.vmem [resolvable:$true] %s840_s0 }
 0x668   :  { %623 = vadd.xlane.f32.xlu1 %v622_v44  ;;  %v619_v45 = vsel %vm74_vm0, %v1478_v43, 0.0  ;;  %v659_v44 = vsub.s32 6, %v1367_v34  ;;  %s1217_s7 = scalar_lea.vmem %s841_s0, 256  ;;  %p1222_p9 = scmp.lt.s32.totalorder %s841_s0, %s841_s0 }
 0x669   :  { %620 = vadd.xlane.f32.xlu0 %v619_v45  ;;  %1121 = vmatprep.subr.bf16.mxu1 %v1120_v38  ;;  %p1218_p8 = scmp.ne.s32.totalorder %s841_s0, %s1217_s7  ;;  %p1223_p10 = scmp.lt.s32.totalorder %s1217_s7, %s1217_s7 }
 0x66a   :  { %1123 = vmatpush3.bf16.msra.mxu1 %v1120_v38  ;;  %v660_v45 = vrot.slane %v1373_v37, %v659_v44 }
 0x66b   :  { %1125 = vmatprep.subr.bf16.mxu1 %v1124_v41  ;;  %p1224_p11 = por %p1223_p10, %p1222_p9 }
 0x66d   :  { %p1225_p12 = pnand %p1224_p11, %p1218_p8 }
 0x66e   :  { %1127 = vmatpush3.bf16.msra.mxu1 %v1124_v41 }
 0x6f5   :  { %v624_v46 = vpop.xlane.xlu1 %623 }
 0x6f6   :  { %v626_v47 = vmul.f32 0.03125, %v624_v46  ;;  %v621_v48 = vpop.xlane.xlu0 %620 }
 0x6f7   :  { %v625_v49 = vmul.f32 0.03125, %v621_v48 }
 0x6f8   :  { %v628_v1 = vsub.f32 %v1476_v42, %v626_v47 }
 0x6f9   :  { %v627_v0 = vsub.f32 %v1478_v43, %v625_v49 }
 0x6fa   :  { %v630_v52 = vmul.f32 %v628_v1, %v628_v1 }
 0x6fb   :  { %v629_v50 = vmul.f32 %v627_v0, %v627_v0 }
 0x6fc   :  { %v634_v53 = vsel %vm74_vm0, %v630_v52, 0.0 }
 0x6fd   :  { %v631_v51 = vsel %vm74_vm0, %v629_v50, 0.0 }
 0x6fe   :  { %632 = vadd.xlane.f32.xlu0 %v631_v51 }
 0x702   :  { %635 = vadd.xlane.f32.xlu0 %v634_v53 }
 0x78b   :  { %v633_v9 = vpop.xlane.xlu0 %632 }
 0x78c   :  { %v637_v10 = vmul.f32 0.03125, %v633_v9 }
 0x78e   :  { %v639_v11 = vadd.f32 1e-05, %v637_v10 }
 0x78f   :  { %v636_v12 = vpop.xlane.xlu0 %635 }
 0x790   :  { %1187 = vrsqrt.f32 %v639_v11  ;;  %v638_v13 = vmul.f32 0.03125, %v636_v12 }
 0x792   :  { %v640_v14 = vadd.f32 1e-05, %v638_v13 }
 0x794   :  { %1189 = vrsqrt.f32 %v640_v14 }
 0x79a   :  { %v1188_v60 = vpop.eup %1187 }
 0x79b   :  { %v643_v17 = vmul.f32 %v1188_v60, %v627_v0 }
 0x79d   :  { %v649_v19 = vmul.f32 %v648_v58, %v643_v17 }
 0x79e   :  { %v1190_v20 = vpop.eup %1189 }
 0x79f   :  { %v644_v21 = vmul.f32 %v1190_v20, %v628_v1  ;;  %v655_v22 = vadd.f32 %v654_v18, %v649_v19 }
 0x7a1   :  { %v650_v23 = vmul.f32 %v648_v58, %v644_v21  ;;  %994 = vmatprep.mubr.msk.f32.mxu0 %vm74_vm0, %v655_v22 }
 0x7a3   :  { %v656_v24 = vadd.f32 %v654_v18, %v650_v23 }
 0x7a5   :  { %995 = vmatmul.mubr.msk.f32.vlgmr.msra.gmra.mrb[6].mxu0 %vm74_vm0, %v656_v24 }
 0x878   :  { %v996_v46 = vpop.f32.mrb[6].mxu0 }
 0x879   :  { %v739_v47 = vadd.f32 %v996_v46, %v660_v45  ;;  %v733_v48 = vpop.f32.mrb[7].mxu0 }
 0x87a   :  { %v734_v49 = vadd.f32 %v733_v48, %v660_v45 }
 0x87b   :  { %v745_v1 = vmul.f32 0.70710677, %v739_v47  ;;  %v743_v55 = vmul.f32 0.5, %v739_v47 }
 0x87c   :  { %v744_v0 = vmul.f32 0.70710677, %v734_v49  ;;  %v742_v53 = vmul.f32 0.5, %v734_v49 }
 0x87d   :  { %1191 = verf.f32 %v745_v1 }
 0x87e   :  { %1193 = verf.f32 %v744_v0 }
 0x887   :  { %v1192_v50 = vpop.eup %1191 }
 0x888   :  { %v1194_v51 = vpop.eup %1193  ;;  %v749_v52 = vadd.f32 1.0, %v1192_v50 }
 0x889   :  { %v748_v54 = vadd.f32 1.0, %v1194_v51 }
 0x88a   :  { %v751_v57 = vmul.f32 %v749_v52, %v743_v55 }
 0x88b   :  { %v750_v56 = vmul.f32 %v748_v54, %v742_v53 }
 0x88d   :  { %1029 = vmatprep.mubr.f32.mxu1 %v750_v56 }
 0x88e   :  { %1030 = vmatmul.mubr.f32.vlgmr.msra.gmra.mrb[2].mxu1 %v751_v57 }
 0x961   :  { %v1031_v62 = vpop.f32.mrb[2].mxu1 }
 0x962   :  { %v828_v63 = vadd.f32 %v1031_v62, %v755_v61  ;;  %v822_v2 = vpop.f32.mrb[3].mxu1 }
 0x963   :  { %v823_v3 = vadd.f32 %v822_v2, %v755_v61 }
 0x964   :  { %v832_v4 = vadd.f32 %v828_v63, %v1476_v42 }
 0x965   :  { %v831_v5 = vadd.f32 %v823_v3, %v1478_v43 }
 0x966   :  { %834 = vst.msk [vmem:[#allocation5 + $0x8] sm:$0xff] %vm74_vm0, %v832_v4 }
 0x967   :  { %833 = vst.msk [vmem:[#allocation5] sm:$0xff] %vm74_vm0, %v831_v5 }
 0x968   :  { %1228 = shalt.err (!%p1225_p12)
}
 0x969   :  { %s1229_s3 = scalar_lea.hbm %s1582_s5, 256 }
 0x96a   :  { %p1230_p13 = scmp.ne.s32.totalorder %s1582_s5, %s1229_s3  ;;  %p1233_p0 = scmp.lt.u32.totalorder %s1229_s3, %s1582_s5 }
 0x96c   :  { %p1235_p1 = pnand %p1233_p0, %p1230_p13 }
 0x96e   :  { %1238 = shalt.err (!%p1235_p1)
}
 0x96f   :  { %846 = dma.vmem_to_hbm [thread:$0]  %s841_s0, 256, %s1582_s5, [#allocation4], %s1244_s28, %s1244_s28, %s1245_s29  }
 0x970   :  { %1241 = dma.done.wait [#allocation4], 256  }
 0x971   :  { %1242 = vsyncadd [#allocation4], 4294967040 }
 0x972   :  { %850 = vsyncpa [#allocation3], 1 }
 0x973   :  { %851 = vsyncpa [#allocation4], 1 }

</bundles_post_ra>
